<compile_context>
chip_gen: v6e
topology: v6e:2x2x1
jax: 0.10.0
libtpu: 0.0.40
codegen_flags: <defaults>
</compile_context>

<pallas_src>
import jax
import jax.numpy as jnp
from jax.experimental import pallas as pl
from jax.experimental.pallas import tpu as pltpu

_LANES = 128  # vreg lane width


def _round_up(n, m):
    return ((n + m - 1) // m) * m


def _perceptron_kernel(w_ref, b_ref, x_ref, o_ref):
    # w_ref, b_ref: SMEM (2,) f32 scalar parameters.
    # x_ref:  VMEM (block_rows, 128) f32  -- batch, lane-dense.
    # o_ref:  VMEM (block_rows, 256) f32  -- the 2 features interleaved on lanes.
    x = x_ref[...]                                # one dense load
    y0 = x * w_ref[0] + b_ref[0]                  # VPU broadcast FMA
    y1 = x * w_ref[1] + b_ref[1]
    # Lane-interleave the two features: o[r, 2l + j] = y_j[r, l].  The flat
    # row-major order of the (rows, 256) output is exactly PyTorch (B, 2).
    # Runs on the otherwise-idle shuffle path; the kernel stays DMA-bound.
    bm, bl = x.shape
    o_ref[...] = jnp.stack([y0, y1], axis=-1).reshape(bm, 2 * bl)


def perceptron_forward(x, w, b):
    """Forward of nn.Linear(1, 2), PyTorch semantics: out = x @ w.T + b.

    x: (B, 1) f32, w: (2, 1) f32, b: (2,) f32  ->  (B, 2) f32.
    """
    B, in_features = x.shape
    out_features = w.shape[0]
    assert in_features == 1 and w.shape == (out_features, in_features)
    assert out_features == 2

    # Lane-dense batch layout: pad only to the next multiple of 128.
    b_pad = _round_up(B, _LANES)
    rows = b_pad // _LANES
    x_flat = x.reshape(-1)
    if b_pad != B:
        x_flat = jnp.pad(x_flat, (0, b_pad - B))
    x2d = x_flat.reshape(rows, _LANES)

    # Batch tile selection for an HBM-bandwidth-bound kernel:
    #   * tiny inputs: one full-extent block (no (8,128) divisibility needed),
    #   * otherwise: split into >= 2 grid steps (v7x megacore) with tiles up to
    #     2048 rows (~6 MiB double-buffered x+out, fits every generation).
    if rows <= 16:
        block_rows = rows
    else:
        block_rows = min(2048, _round_up(pl.cdiv(rows, 2), 8))
    grid = (pl.cdiv(rows, block_rows),)

    w_flat = w.reshape(out_features).astype(jnp.float32)
    b_flat = b.astype(jnp.float32)

    out2d = pl.pallas_call(
        _perceptron_kernel,
        out_shape=jax.ShapeDtypeStruct((rows, out_features * _LANES), jnp.float32),
        grid=grid,
        in_specs=[
            # 2 weights + 2 biases: tiny arrays in SMEM, no VMEM tiles / DMAs.
            pl.BlockSpec(memory_space=pltpu.MemorySpace.SMEM),
            pl.BlockSpec(memory_space=pltpu.MemorySpace.SMEM),
            # Lane-dense batch tile; last (partial) block is masked by Pallas.
            pl.BlockSpec((block_rows, _LANES), lambda i: (i, 0)),
        ],
        out_specs=pl.BlockSpec((block_rows, out_features * _LANES),
                               lambda i: (i, 0)),
        compiler_params=pltpu.CompilerParams(
            dimension_semantics=("parallel",),    # megacore sharding on v7x
            vmem_limit_bytes=32 * 1024 * 1024,    # safe on v5e/v6e/v7x
        ),
    )(w_flat, b_flat, x2d)

    # (rows, 256) row-major == (b_pad, 2) interleaved: free reshape, then strip
    # the batch padding.  No transpose, no extra HBM pass over the output.
    out = out2d.reshape(b_pad, out_features)
    return out if b_pad == B else out[:B]


if __name__ == "__main__":
    key = jax.random.PRNGKey(0)
    kx, kw, kb = jax.random.split(key, 3)

    B, in_features, out_features = 8, 1, 2

    # Deterministic parameter init mimicking torch.nn.Linear:
    # U(-1/sqrt(fan_in), 1/sqrt(fan_in)) for both weight and bias.
    bound = 1.0 / (in_features ** 0.5)
    w = jax.random.uniform(kw, (out_features, in_features),
                           minval=-bound, maxval=bound, dtype=jnp.float32)
    b = jax.random.uniform(kb, (out_features,),
                           minval=-bound, maxval=bound, dtype=jnp.float32)
    x = jax.random.normal(kx, (B, in_features), dtype=jnp.float32)

    out = jax.block_until_ready(perceptron_forward(x, w, b))

    # Reference check against plain JAX linear (PyTorch semantics: x @ W^T + b).
    ref = x @ w.T + b[None, :]
    assert out.shape == (B, out_features)
    assert jnp.allclose(out, ref, atol=1e-5, rtol=1e-5)

    # NOTE: at B=8 wall-clock is launch-overhead bound; for large B the kernel
    # moves ~12 B of HBM per batch element with 2048-row tiles (near roofline).
    print("KERNEL_OK")
</pallas_src>

<mosaic_0001>
module attributes {stable_mosaic.version = 11 : i64} {
  func.func @_perceptron_kernel(%arg0: i32, %arg1: memref<2xf32, #tpu.memory_space<smem>>, %arg2: memref<2xf32, #tpu.memory_space<smem>>, %arg3: memref<1x128xf32, #tpu.memory_space<vmem>>, %arg4: memref<1x256xf32, #tpu.memory_space<vmem>>) attributes {dimension_semantics = [#tpu.dimension_semantics<parallel>], iteration_bounds = array<i64: 1>, scalar_prefetch = 0 : i64, scratch_operands = 0 : i64, tpu.core_type = #tpu.core_type<tc>, window_params = [{transform_indices = @transform_0, window_bounds = array<i64: 2>}, {transform_indices = @transform_1, window_bounds = array<i64: 2>}, {transform_indices = @transform_2, window_bounds = array<i64: 1, 128>}, {transform_indices = @transform_3, window_bounds = array<i64: 1, 256>}]} {
    %c0 = arith.constant 0 : index
    %c0_0 = arith.constant 0 : index
    %0 = vector.load %arg3[%c0, %c0_0] : memref<1x128xf32, #tpu.memory_space<vmem>>, vector<1x128xf32>
    %c0_1 = arith.constant 0 : index
    %1 = memref.load %arg1[%c0_1] : memref<2xf32, #tpu.memory_space<smem>>
    %2 = vector.broadcast %1 : f32 to vector<1x128xf32>
    %3 = arith.mulf %0, %2 : vector<1x128xf32>
    %c0_2 = arith.constant 0 : index
    %4 = memref.load %arg2[%c0_2] : memref<2xf32, #tpu.memory_space<smem>>
    %5 = vector.broadcast %4 : f32 to vector<1x128xf32>
    %6 = arith.addf %3, %5 : vector<1x128xf32>
    %c1 = arith.constant 1 : index
    %7 = memref.load %arg1[%c1] : memref<2xf32, #tpu.memory_space<smem>>
    %8 = vector.broadcast %7 : f32 to vector<1x128xf32>
    %9 = arith.mulf %0, %8 : vector<1x128xf32>
    %c1_3 = arith.constant 1 : index
    %10 = memref.load %arg2[%c1_3] : memref<2xf32, #tpu.memory_space<smem>>
    %11 = vector.broadcast %10 : f32 to vector<1x128xf32>
    %12 = arith.addf %9, %11 : vector<1x128xf32>
    %13 = vector.shape_cast %6 : vector<1x128xf32> to vector<1x128x1xf32>
    %14 = vector.shape_cast %12 : vector<1x128xf32> to vector<1x128x1xf32>
    %15 = tpu.concatenate %13, %14 in 2 : vector<1x128x1xf32>, vector<1x128x1xf32> -> vector<1x128x2xf32>
    %16 = vector.shape_cast %15 : vector<1x128x2xf32> to vector<1x256xf32>
    %c0_4 = arith.constant 0 : index
    %c0_5 = arith.constant 0 : index
    %17 = vector.load %arg4[%c0_4, %c0_5] : memref<1x256xf32, #tpu.memory_space<vmem>>, vector<1x256xf32>
    tpu.vector_store %arg4[%c0_4, %c0_5], %16 {strides = array<i32>} : memref<1x256xf32, #tpu.memory_space<vmem>>, vector<1x256xf32>,
    return
  }
  func.func @transform_0(%arg0: i32) -> i32 {
    %c0_i32 = arith.constant 0 : i32
    %c0_i32_0 = arith.constant 0 : i32
    return %c0_i32 : i32
  }
  func.func @transform_1(%arg0: i32) -> i32 {
    %c0_i32 = arith.constant 0 : i32
    %c0_i32_0 = arith.constant 0 : i32
    return %c0_i32 : i32
  }
  func.func @transform_2(%arg0: i32) -> (i32, i32) {
    %c0_i32 = arith.constant 0 : i32
    %c0_i32_0 = arith.constant 0 : i32
    return %arg0, %c0_i32 : i32, i32
  }
  func.func @transform_3(%arg0: i32) -> (i32, i32) {
    %c0_i32 = arith.constant 0 : i32
    %c0_i32_0 = arith.constant 0 : i32
    return %arg0, %c0_i32 : i32, i32
  }
}

</mosaic_0001>

<bundles_post_ra>
// kernel: tpu_custom_call.1
= control target key start
LH: loop header
LB: loop body
LE: loop exit
PB: predicated region body
PF: predicated region fallthrough
CT: control target
= control target key end

     0   :  { %8 = vsyncpa [#allocation4], 0  ;;  %s2964_s0 = inlined_call_operand.hbm [shape: f32[2], index: 0, kind: input, shape index: {}]   ;;  %s2965_s1 = inlined_call_operand.vmem [shape: f32[2], index: 1, kind: input, shape index: {}]   ;;  %s2966_s2 = inlined_call_operand.vmem [shape: f32[1,128], index: 2, kind: input, shape index: {}]   ;;  %s2967_s3 = inlined_call_operand.hbm [shape: f32[1,256], index: 3, kind: output, shape index: {}]  }
   0x1   :  { %9 = vsyncpa [#allocation5], 0 }
   0x2   :  { %10 = vsyncpa [#allocation3], 0  ;;  %s25_s14 = sshll.u32 %s2965_s1, 4  ;;  %s1836_s15 = smov [#allocation2]   ;;  %s26_s14 = int_to_ptr.vmem [resolvable:$true] %s25_s14 }
   0x3   :  { %18 = dma.hbm_to_smem %s2964_s0, 16, %s1836_s15, [#allocation4]  }
   0x4   :  { %s1798_s18 = scalar_lea.vmem %s26_s14, 16  ;;  %p1803_p1 = scmp.lt.s32.totalorder %s26_s14, %s26_s14 }
   0x5   :  { %p1799_p0 = scmp.ne.s32.totalorder %s26_s14, %s1798_s18  ;;  %p1804_p2 = scmp.lt.s32.totalorder %s1798_s18, %s1798_s18 }
   0x7   :  { %p1805_p3 = por %p1804_p2, %p1803_p1 }
   0x9   :  { %p1806_p4 = pnand %p1805_p3, %p1799_p0 }
   0xb   :  { %1809 = shalt.err (!%p1806_p4)
}
   0xc   :  { %s1837_s19 = smov [#allocation6]  }
   0xd   :  { %28 = dma.vmem_to_smem %s26_s14, 16, %s1837_s19, [#allocation5]  }
   0xe   :  { %1830 = dma.done.wait [#allocation4], 16  }
   0xf   :  { %1831 = vsyncadd [#allocation4], 4294967280 }
  0x10   :  { %1832 = dma.done.wait [#allocation5], 16  }
  0x11   :  { %1833 = vsyncadd [#allocation5], 4294967280 }
  0x12   :  { %37 = sfence }
  0x13   :  { %s39_s1 = sld [smem:[#allocation2]]  ;;  %v2968_v0 = vlaneseq  ;;  %v38_v2 = vld [vmem:[%s2966_s2] sm:$0x1]  ;;  %v1838_v26 = vmov 1983009808   ;;  %vm185_vm0 = vcmask 7168  }
  0x14   :  { %s42_s20 = sld [smem:[#allocation6]]  ;;  %v204_v27 = vunpack.c.l.s4 %v1838_v26  ;;  %v1839_v30 = vmov 1934713408   ;;  %v1840_v44 = vmov 0.0   ;;  %s1841_s2 = smov 16   ;;  %vm1490_vm1 = vcmask 15360  }
  0x15   :  { %v1933_v1 = vshrl.u32 %v2968_v0, 7  ;;  %s1718_s22 = sld [smem:[#allocation2 + $0x1]]  ;;  %v219_v31 = vunpack.c.l.s4 %v1839_v30  ;;  %s1842_s24 = smov 2   ;;  %vm1492_vm2 = vcmask 31744   ;;  %vm1494_vm3 = vcmask 48128  }
  0x16   :  { %s1719_s23 = sld [smem:[#allocation6 + $0x1]]  ;;  %v205_v32 = vunpack.c.0.s8 %v204_v27  ;;  %s1843_s25 = smov 32   ;;  %vm1496_vm4 = vcmask 64512   ;;  %vm1498_vm5 = vcmask 80896   ;;  %vm1500_vm6 = vcmask 97280  }
  0x17   :  { %3064 = vst [vmem:[#allocation11_spill] sm:$0xff] %v1933_v1  ;;  %v53_v6 = vsub.s32 0, %v1933_v1  ;;  %v220_v35 = vunpack.c.0.s8 %v219_v31  ;;  %s1844_s26 = smov 18   ;;  %s1845_s27 = smov 48   ;;  %vm1502_vm7 = vcmask 113664   ;;  %vm1504_vm8 = vcmask 130048  }
  0x18   :  { %v1960_v36 = vsub.s32 %v205_v32, %v1933_v1  ;;  %s1846_s28 = smov 34   ;;  %s2991_s29 = smov 64   ;;  %vm1506_vm9 = vcmask 146432   ;;  %vm3018_vm10 = vcmask 162816   ;;  %vm3019_vm11 = vcmask 179200  }
  0x19   :  { %v40_v3 = vstv %s39_s1  ;;  %v1963_v39 = vsub.s32 %v220_v35, %v1933_v1  ;;  %s2995_s30 = smov 50   ;;  %s1849_s4 = smov 4   ;;  %vm3020_vm12 = vcmask 195584   ;;  %vm3022_vm13 = vcmask 211968  }
  0x1a   :  { %v41_v4 = vmul.f32 %v40_v3, %v38_v2  ;;  %v43_v5 = vstv %s42_s20  ;;  %s2988_s5 = smov 66   ;;  %s1851_s6 = smov 8   ;;  %vm3021_vm14 = vcmask 228352   ;;  %vm3024_vm15 = vcmask 244736  }
  0x1b   :  { %v46_v9 = vstv %s1718_s22  ;;  %s1852_s7 = smov 6   ;;  %s1853_s8 = smov 20  }
  0x1c   :  { %v44_v7 = vadd.f32 %v43_v5, %v41_v4  ;;  %v47_v10 = vmul.f32 %v46_v9, %v38_v2  ;;  %v49_v11 = vstv %s1719_s23  ;;  %s1854_s9 = smov 10   ;;  %s1855_s10 = smov 24  }
  0x1d   :  { %s1856_s11 = smov 22   ;;  %s1857_s12 = smov 36  }
  0x1e   :  { %v54_v8 = vrot.slane %v44_v7, %v53_v6  ;;  %v50_v12 = vadd.f32 %v49_v11, %v47_v10  ;;  %s1858_s13 = smov 26   ;;  %s1859_s14 = smov 40  }
  0x1f   :  { %s1860_s15 = smov 38   ;;  %s2997_s16 = smov 52  }
  0x20   :  { %64 = vbcast.lane.b32.xlu1 %v54_v8, 272  ;;  %56 = vbcast.lane.b32.xlu0 %v54_v8, 256  ;;  %v121_v13 = vrot.slane %v50_v12, %v53_v6  ;;  %s1862_s17 = smov 42   ;;  %s2994_s18 = smov 56  }
  0x21   :  { %s2993_s19 = smov 54   ;;  %s2989_s1 = smov 68  }
  0x22   :  { %s2992_s20 = smov 58   ;;  %s2987_s0 = smov 72  }
  0x23   :  { %s2986_s21 = smov 70   ;;  %s1869_s22 = smov 12  }
  0x24   :  { %68 = vbcast.lane.b32.xlu1 %v54_v8, 280  ;;  %60 = vbcast.lane.b32.xlu0 %v54_v8, 264  ;;  %s2990_s23 = smov 74  }
  0x28   :  { %76 = vbcast.lane.b32.xlu1 %v54_v8, 296  ;;  %72 = vbcast.lane.b32.xlu0 %v54_v8, 288 }
  0x2c   :  { %84 = vbcast.lane.b32.xlu1 %v54_v8, 312  ;;  %80 = vbcast.lane.b32.xlu0 %v54_v8, 304 }
  0x30   :  { %92 = vbcast.lane.b32.xlu1 %v54_v8, 328  ;;  %88 = vbcast.lane.b32.xlu0 %v54_v8, 320 }
  0x34   :  { %100 = vbcast.lane.b32.xlu1 %v54_v8, 344  ;;  %96 = vbcast.lane.b32.xlu0 %v54_v8, 336 }
  0x38   :  { %108 = vbcast.lane.b32.xlu1 %v54_v8, 360  ;;  %104 = vbcast.lane.b32.xlu0 %v54_v8, 352 }
  0x3c   :  { %116 = vbcast.lane.b32.xlu1 %v54_v8, 376  ;;  %112 = vbcast.lane.b32.xlu0 %v54_v8, 368 }
  0x40   :  { %127 = vbcast.lane.b32.xlu1 %v121_v13, 264  ;;  %123 = vbcast.lane.b32.xlu0 %v121_v13, 256 }
  0x44   :  { %135 = vbcast.lane.b32.xlu1 %v121_v13, 280  ;;  %131 = vbcast.lane.b32.xlu0 %v121_v13, 272 }
  0x48   :  { %143 = vbcast.lane.b32.xlu1 %v121_v13, 296  ;;  %139 = vbcast.lane.b32.xlu0 %v121_v13, 288 }
  0x4c   :  { %151 = vbcast.lane.b32.xlu1 %v121_v13, 312  ;;  %147 = vbcast.lane.b32.xlu0 %v121_v13, 304 }
  0x50   :  { %159 = vbcast.lane.b32.xlu1 %v121_v13, 328  ;;  %155 = vbcast.lane.b32.xlu0 %v121_v13, 320 }
  0x54   :  { %167 = vbcast.lane.b32.xlu1 %v121_v13, 344  ;;  %163 = vbcast.lane.b32.xlu0 %v121_v13, 336 }
  0x58   :  { %175 = vbcast.lane.b32.xlu1 %v121_v13, 360  ;;  %171 = vbcast.lane.b32.xlu0 %v121_v13, 352 }
  0x5c   :  { %183 = vbcast.lane.b32.xlu1 %v121_v13, 376  ;;  %179 = vbcast.lane.b32.xlu0 %v121_v13, 368 }
  0x92   :  { %v65_v14 = vpop.permute.xlu1 %64  ;;  %v57_v15 = vpop.permute.xlu0 %56 }
  0x96   :  { %v69_v16 = vpop.permute.xlu1 %68  ;;  %v61_v17 = vpop.permute.xlu0 %60 }
  0x9a   :  { %v77_v18 = vpop.permute.xlu1 %76  ;;  %v73_v19 = vpop.permute.xlu0 %72 }
  0x9e   :  { %v1939_v20 = vpop.permute.xlu1 %84  ;;  %v1941_v21 = vpop.permute.xlu0 %80 }
  0xa2   :  { %v1943_v22 = vpop.permute.xlu1 %92  ;;  %v1945_v23 = vpop.permute.xlu0 %88 }
  0xa6   :  { %v1947_v24 = vpop.permute.xlu1 %100  ;;  %v1949_v25 = vpop.permute.xlu0 %96 }
  0xaa   :  { %v1951_v28 = vpop.permute.xlu1 %108  ;;  %v1953_v29 = vpop.permute.xlu0 %104 }
  0xae   :  { %v1955_v33 = vpop.permute.xlu1 %116  ;;  %v1957_v34 = vpop.permute.xlu0 %112 }
  0xb2   :  { %v128_v37 = vpop.permute.xlu1 %127  ;;  %v124_v38 = vpop.permute.xlu0 %123 }
  0xb3   :  { %v187_v40 = vsel %vm185_vm0, %v61_v17, %v128_v37  ;;  %v186_v41 = vsel %vm185_vm0, %v57_v15, %v124_v38 }
  0xb4   :  { %v258_v42 = vrot.slane %v187_v40, %v1960_v36  ;;  %v209_v43 = vrot.slane %v186_v41, %v1960_v36  ;;  %v202_v45 = vcombine.high %v186_v41, %v1840_v44  ;;  %v251_v51 = vcombine.high %v187_v40, %v1840_v44 }
  0xb6   :  { %v136_v46 = vpop.permute.xlu1 %135  ;;  %v132_v47 = vpop.permute.xlu0 %131  ;;  %v1971_v48 = vrot.slane %v209_v43, %v1963_v39  ;;  %v273_v50 = vrot.slane %v258_v42, %v1963_v39  ;;  %v1982_v55 = vrot.slane %v202_v45, %v1960_v36  ;;  %v217_v56 = vcombine.high %v209_v43, %v1840_v44 }
  0xb7   :  { %v188_v49 = vsel %vm185_vm0, %v65_v14, %v132_v47  ;;  %v189_v52 = vsel %vm185_vm0, %v69_v16, %v136_v46  ;;  %v1993_v63 = vrot.slane %v251_v51, %v1960_v36  ;;  %v266_v8 = vcombine.high %v258_v42, %v1840_v44 }
  0xb8   :  { %3065 = vst [vmem:[#allocation12_spill] sm:$0xff] %v1971_v48  ;;  %v307_v53 = vrot.slane %v188_v49, %v1960_v36  ;;  %1015 = vrot.lane.b32.xlu1 %v273_v50, %s1841_s2  ;;  %v247_v54 = vcombine.high %v1971_v48, %v1840_v44  ;;  %v1986_v59 = vrot.slane %v189_v52, %v1960_v36 }
  0xb9   :  { %v349_v4 = vcombine.high %v189_v52, %v1840_v44  ;;  %v300_v5 = vcombine.high %v188_v49, %v1840_v44  ;;  %v296_v7 = vcombine.high %v273_v50, %v1840_v44  ;;  %v231_v13 = vrot.slane %v217_v56, %v1963_v39 }
  0xba   :  { %v144_v57 = vpop.permute.xlu1 %143  ;;  %v140_v58 = vpop.permute.xlu0 %139  ;;  %987 = vrot.lane.b32.xlu0 %v247_v54, %s1842_s24  ;;  %v322_v62 = vrot.slane %v307_v53, %v1963_v39  ;;  %v371_v16 = vrot.slane %v1986_v59, %v1963_v39  ;;  %v2024_v17 = vrot.slane %v1982_v55, %v1963_v39  ;;  %v2059_v42 = vcombine.high %v307_v53, %v1840_v44 }
  0xbb   :  { %v191_v60 = vsel %vm185_vm0, %v77_v18, %v144_v57  ;;  %v190_v61 = vsel %vm185_vm0, %v73_v19, %v140_v58  ;;  %v2035_v27 = vrot.slane %v349_v4, %v1960_v36  ;;  %v248_v53 = vcombine.high %v231_v13, %v1840_v44 }
  0xbc   :  { %v447_v2 = vcombine.high %v191_v60, %v1840_v44  ;;  %v1997_v3 = vrot.slane %v191_v60, %v1960_v36  ;;  %v2002_v6 = vrot.slane %v190_v61, %v1960_v36  ;;  %1047 = vrot.lane.b32.xlu1 %v322_v62, %s1843_s25  ;;  %v345_v30 = vcombine.high %v322_v62, %v1840_v44 }
  0xbd   :  { %v398_v43 = vcombine.high %v190_v61, %v1840_v44  ;;  %v394_v52 = vcombine.high %v371_v16, %v1840_v44  ;;  %v2076_v54 = vrot.slane %v266_v8, %v1963_v39 }
  0xbe   :  { %v2008_v9 = vrot.slane %v447_v2, %v1960_v36  ;;  %v2012_v10 = vcombine.high %v1997_v3, %v1840_v44  ;;  %v152_v11 = vpop.permute.xlu1 %151  ;;  %v148_v12 = vpop.permute.xlu0 %147  ;;  %1019 = vrot.lane.b32.xlu0 %v296_v7, %s1844_s26  ;;  %v420_v31 = vrot.slane %v2002_v6, %v1963_v39 }
  0xbf   :  { %v193_v14 = vsel %vm185_vm0, %v1939_v20, %v152_v11  ;;  %v192_v15 = vsel %vm185_vm0, %v1941_v21, %v148_v12  ;;  %v2038_v21 = vrot.slane %v300_v5, %v1960_v36 }
  0xc0   :  { %v545_v18 = vcombine.high %v193_v14, %v1840_v44  ;;  %v2028_v19 = vrot.slane %v193_v14, %v1960_v36  ;;  %v496_v20 = vcombine.high %v192_v15, %v1840_v44  ;;  %v2032_v26 = vrot.slane %v192_v15, %v1960_v36  ;;  %1079 = vrot.lane.b32.xlu1 %v371_v16, %s1845_s27 }
  0xc1   :  { %v2119_v16 = vrot.slane %v398_v43, %v1960_v36 }
  0xc2   :  { %v2045_v32 = vrot.slane %v545_v18, %v1960_v36  ;;  %v2049_v35 = vcombine.high %v2028_v19, %v1840_v44  ;;  %v2052_v37 = vrot.slane %v496_v20, %v1960_v36  ;;  %v2056_v38 = vcombine.high %v2032_v26, %v1840_v44  ;;  %v160_v40 = vpop.permute.xlu1 %159  ;;  %v156_v41 = vpop.permute.xlu0 %155  ;;  %1051 = vrot.lane.b32.xlu0 %v345_v30, %s1846_s28 }
  0xc3   :  { %v195_v45 = vsel %vm185_vm0, %v1943_v22, %v160_v40  ;;  %v194_v46 = vsel %vm185_vm0, %v1945_v23, %v156_v41  ;;  %v443_v22 = vcombine.high %v420_v31, %v1840_v44  ;;  %v2126_v40 = vrot.slane %v1993_v63, %v1963_v39 }
  0xc4   :  { %v643_v47 = vcombine.high %v195_v45, %v1840_v44  ;;  %v650_v49 = vrot.slane %v195_v45, %v1960_v36  ;;  %v594_v50 = vcombine.high %v194_v46, %v1840_v44  ;;  %v601_v51 = vrot.slane %v194_v46, %v1960_v36  ;;  %1111 = vrot.lane.b32.xlu1 %v420_v31, %s2991_s29  ;;  %s1876_s29 = smov 46  }
  0xc5   :  { %v249_v31 = vcombine.high %v2024_v17, %v1840_v44  ;;  %v526_v48 = vcombine.high %v2052_v37, %v1840_v44 }
  0xc6   :  { %v657_v23 = vrot.slane %v643_v47, %v1960_v36  ;;  %v658_v56 = vcombine.high %v650_v49, %v1840_v44  ;;  %v2081_v57 = vrot.slane %v650_v49, %v1963_v39  ;;  %v2084_v58 = vrot.slane %v594_v50, %v1960_v36  ;;  %v168_v60 = vpop.permute.xlu1 %167  ;;  %v164_v61 = vpop.permute.xlu0 %163  ;;  %1083 = vrot.lane.b32.xlu0 %v394_v52, %s2995_s30  ;;  %s3001_s30 = smov 78  }
  0xc7   :  { %v2087_v62 = vcombine.high %v601_v51, %v1840_v44  ;;  %v2090_v2 = vrot.slane %v601_v51, %v1963_v39  ;;  %v197_v4 = vsel %vm185_vm0, %v1947_v24, %v168_v60  ;;  %v196_v5 = vsel %vm185_vm0, %v1949_v25, %v164_v61 }
  0xc8   :  { %3066 = vst [vmem:[#allocation13_spill] sm:$0xff] %v2081_v57  ;;  %v2098_v7 = vrot.slane %v658_v56, %v1963_v39  ;;  %v2101_v8 = vcombine.high %v657_v23, %v1840_v44  ;;  %v2104_v11 = vrot.slane %v657_v23, %v1963_v39  ;;  %v2108_v12 = vcombine.high %v2081_v57, %v1840_v44 }
  0xc9   :  { %3067 = vst [vmem:[#allocation14_spill] sm:$0xff] %v2090_v2  ;;  %v2112_v24 = vcombine.high %v2084_v58, %v1840_v44  ;;  %v741_v14 = vcombine.high %v197_v4, %v1840_v44  ;;  %v748_v25 = vrot.slane %v197_v4, %v1960_v36  ;;  %v692_v15 = vcombine.high %v196_v5, %v1840_v44 }
  0xca   :  { %3068 = vst [vmem:[#allocation15_spill] sm:$0xff] %v2108_v12  ;;  %991 = vrot.lane.b32.xlu1 %v231_v13, %s1849_s4  ;;  %v699_v18 = vrot.slane %v196_v5, %v1960_v36  ;;  %v176_v20 = vpop.permute.xlu1 %175  ;;  %v172_v30 = vpop.permute.xlu0 %171  ;;  %1115 = vrot.lane.b32.xlu0 %v443_v22, %s2988_s5  ;;  %v2407_v2 = vrot.slane %v2087_v62, %v1963_v39  ;;  %s1873_s5 = smov 44  }
  0xcb   :  { %v755_v41 = vrot.slane %v741_v14, %v1960_v36  ;;  %v756_v45 = vcombine.high %v748_v25, %v1840_v44  ;;  %v2131_v13 = vrot.slane %v748_v25, %v1963_v39  ;;  %v706_v43 = vrot.slane %v692_v15, %v1960_v36 }
  0xcc   :  { %v707_v46 = vcombine.high %v699_v18, %v1840_v44  ;;  %v2137_v47 = vrot.slane %v699_v18, %v1963_v39  ;;  %v199_v49 = vsel %vm185_vm0, %v1951_v28, %v176_v20  ;;  %v198_v50 = vsel %vm185_vm0, %v1953_v29, %v172_v30 }
  0xcd   :  { %3069 = vst [vmem:[#allocation16_spill] sm:$0xff] %v2131_v13  ;;  %v2144_v51 = vrot.slane %v756_v45, %v1963_v39  ;;  %v2147_v52 = vcombine.high %v755_v41, %v1840_v44  ;;  %v2150_v23 = vrot.slane %v755_v41, %v1963_v39  ;;  %v2154_v22 = vcombine.high %v2131_v13, %v1840_v44 }
  0xce   :  { %3070 = vst [vmem:[#allocation17_spill] sm:$0xff] %v2137_v47  ;;  %999 = vrot.lane.b32.xlu1 %v2024_v17, %s1851_s6  ;;  %v2159_v28 = vrot.slane %v707_v46, %v1963_v39  ;;  %v2162_v29 = vcombine.high %v706_v43, %v1840_v44  ;;  %v2165_v56 = vrot.slane %v706_v43, %v1963_v39  ;;  %v184_v61 = vpop.permute.xlu1 %183  ;;  %v180_v4 = vpop.permute.xlu0 %179 }
  0xcf   :  { %3071 = vst [vmem:[#allocation18_spill] sm:$0xff] %v2144_v51  ;;  %3072 = vst [vmem:[#allocation19_spill] sm:$0xff] %v2154_v22  ;;  %v2169_v60 = vcombine.high %v2137_v47, %v1840_v44  ;;  %v839_v5 = vcombine.high %v199_v49, %v1840_v44  ;;  %v846_v14 = vrot.slane %v199_v49, %v1960_v36  ;;  %995 = vrot.lane.b32.xlu0 %v248_v53, %s1852_s7 }
  0xd0   :  { %3073 = vst [vmem:[#allocation20_spill] sm:$0xff] %v2159_v28  ;;  %v790_v17 = vcombine.high %v198_v50, %v1840_v44  ;;  %v797_v25 = vrot.slane %v198_v50, %v1960_v36  ;;  %v201_v15 = vsel %vm185_vm0, %v1955_v33, %v184_v61  ;;  %v200_v18 = vsel %vm185_vm0, %v1957_v34, %v180_v4 }
  0xd1   :  { %3074 = vst [vmem:[#allocation21_spill] sm:$0xff] %v2169_v60  ;;  %v297_v20 = vcombine.high %v2076_v54, %v1840_v44  ;;  %v329_v30 = vrot.slane %v2059_v42, %v1963_v39  ;;  %v853_v41 = vrot.slane %v839_v5, %v1960_v36  ;;  %v854_v45 = vcombine.high %v846_v14, %v1840_v44 }
  0xd2   :  { %v2187_v43 = vrot.slane %v846_v14, %v1963_v39  ;;  %v804_v53 = vrot.slane %v790_v17, %v1960_v36  ;;  %1023 = vrot.lane.b32.xlu1 %v2076_v54, %s1853_s8  ;;  %v805_v33 = vcombine.high %v797_v25, %v1840_v44  ;;  %v2194_v34 = vrot.slane %v797_v25, %v1963_v39 }
  0xd3   :  { %v937_v42 = vcombine.high %v201_v15, %v1840_v44  ;;  %v944_v46 = vrot.slane %v201_v15, %v1960_v36  ;;  %v2199_v49 = vrot.slane %v854_v45, %v1963_v39  ;;  %v2202_v50 = vcombine.high %v853_v41, %v1840_v44  ;;  %1003 = vrot.lane.b32.xlu0 %v249_v31, %s1854_s9 }
  0xd4   :  { %3075 = vst [vmem:[#allocation22_spill] sm:$0xff] %v2187_v43  ;;  %3076 = vst [vmem:[#allocation23_spill] sm:$0xff] %v2194_v34  ;;  %v2205_v61 = vrot.slane %v853_v41, %v1963_v39  ;;  %v2209_v54 = vcombine.high %v2187_v43, %v1840_v44  ;;  %v2213_v4 = vrot.slane %v805_v33, %v1963_v39  ;;  %vm3023_vm0 = vcmask 261120  }
  0xd5   :  { %3077 = vst [vmem:[#allocation24_spill] sm:$0xff] %v2199_v49  ;;  %v2216_v5 = vcombine.high %v804_v53, %v1840_v44  ;;  %v2219_v14 = vrot.slane %v804_v53, %v1963_v39  ;;  %v2223_v17 = vcombine.high %v2194_v34, %v1840_v44  ;;  %v951_v25 = vrot.slane %v937_v42, %v1960_v36 }
  0xd6   :  { %3078 = vst [vmem:[#allocation25_spill] sm:$0xff] %v2209_v54  ;;  %v952_v15 = vcombine.high %v944_v46, %v1840_v44  ;;  %v2228_v41 = vrot.slane %v944_v46, %v1963_v39  ;;  %v888_v31 = vcombine.high %v200_v18, %v1840_v44  ;;  %1031 = vrot.lane.b32.xlu1 %v2126_v40, %s1855_s10 }
  0xd7   :  { %3079 = vst [vmem:[#allocation26_spill] sm:$0xff] %v2223_v17  ;;  %v364_v45 = vcombine.high %v1986_v59, %v1840_v44  ;;  %v2237_v53 = vcombine.high %v2002_v6, %v1840_v44  ;;  %v895_v33 = vrot.slane %v200_v18, %v1960_v36  ;;  %v337_v42 = vrot.slane %v2038_v21, %v1963_v39 }
  0xd8   :  { %3080 = vst [vmem:[#allocation27_spill] sm:$0xff] %v2228_v41  ;;  %v2243_v46 = vrot.slane %v952_v15, %v1963_v39  ;;  %v2246_v0 = vcombine.high %v951_v25, %v1840_v44  ;;  %v2249_v1 = vrot.slane %v951_v25, %v1963_v39  ;;  %v2253_v59 = vcombine.high %v2228_v41, %v1840_v44 }
  0xd9   :  { %1027 = vrot.lane.b32.xlu0 %v297_v20, %s1856_s11  ;;  %v902_v6 = vrot.slane %v888_v31, %v1960_v36  ;;  %v903_v18 = vcombine.high %v895_v33, %v1840_v44  ;;  %v2259_v15 = vrot.slane %v895_v33, %v1963_v39  ;;  %v298_v54 = vcombine.high %v2126_v40, %v1840_v44 }
  0xda   :  { %3081 = vst [vmem:[#allocation28_spill] sm:$0xff] %v2243_v46  ;;  %3082 = vst [vmem:[#allocation29_spill] sm:$0xff] %v2253_v59  ;;  %1055 = vrot.lane.b32.xlu1 %v329_v30, %s1857_s12  ;;  %v346_v25 = vcombine.high %v329_v30, %v1840_v44  ;;  %v330_v59 = vcombine.high %v2038_v21, %v1840_v44  ;;  %v379_v20 = vcombine.high %v2035_v27, %v1840_v44 }
  0xdb   :  { %3083 = vst [vmem:[#allocation30_spill] sm:$0xff] %v2259_v15  ;;  %v428_v36 = vcombine.high %v2119_v16, %v1840_v44  ;;  %v2272_v31 = vrot.slane %v903_v18, %v1963_v39  ;;  %v2275_v33 = vcombine.high %v902_v6, %v1840_v44  ;;  %v2278_v40 = vrot.slane %v902_v6, %v1963_v39 }
  0xdc   :  { %v2282_v30 = vcombine.high %v2259_v15, %v1840_v44  ;;  %v378_v21 = vrot.slane %v364_v45, %v1963_v39  ;;  %v347_v41 = vcombine.high %v337_v42, %v1840_v44  ;;  %v2288_v18 = vrot.slane %v330_v59, %v1963_v39 }
  0xdd   :  { %3084 = vst [vmem:[#allocation31_spill] sm:$0xff] %v2272_v31  ;;  %3085 = vst [vmem:[#allocation32_spill] sm:$0xff] %v2278_v40  ;;  %1035 = vrot.lane.b32.xlu0 %v298_v54, %s1858_s13  ;;  %v2291_v43 = vrot.slane %v379_v20, %v1963_v39  ;;  %v2294_v6 = vrot.slane %v428_v36, %v1963_v39  ;;  %v2298_v15 = vrot.slane %v1997_v3, %v1963_v39 }
  0xde   :  { %3086 = vst [vmem:[#allocation33_spill] sm:$0xff] %v2282_v30  ;;  %v2302_v54 = vrot.slane %v2012_v10, %v1963_v39  ;;  %v2306_v45 = vrot.slane %v2008_v9, %v1963_v39  ;;  %1063 = vrot.lane.b32.xlu1 %v337_v42, %s1859_s14  ;;  %v2311_v59 = vcombine.high %v2288_v18, %v1840_v44 }
  0xdf   :  { %v2315_v20 = vcombine.high %v2291_v43, %v1840_v44  ;;  %v477_v3 = vcombine.high %v2008_v9, %v1840_v44  ;;  %v2321_v10 = vrot.slane %v2032_v26, %v1963_v39  ;;  %v2325_v36 = vcombine.high %v2294_v6, %v1840_v44 }
  0xe0   :  { %v2329_v42 = vcombine.high %v2298_v15, %v1840_v44  ;;  %v2333_v30 = vcombine.high %v2302_v54, %v1840_v44  ;;  %v2337_v17 = vcombine.high %v2306_v45, %v1840_v44  ;;  %v2345_v26 = vrot.slane %v2056_v38, %v1963_v39 }
  0xe1   :  { %1059 = vrot.lane.b32.xlu0 %v346_v25, %s1860_s15  ;;  %v2341_v9 = vrot.slane %v477_v3, %v1963_v39  ;;  %v2349_v34 = vcombine.high %v2321_v10, %v1840_v44  ;;  %v2353_v22 = vrot.slane %v2052_v37, %v1963_v39  ;;  %v2359_v25 = vrot.slane %v2028_v19, %v1963_v39 }
  0xe2   :  { %v2363_v3 = vrot.slane %v2049_v35, %v1963_v39  ;;  %v2367_v38 = vrot.slane %v2045_v32, %v1963_v39  ;;  %1087 = vrot.lane.b32.xlu1 %v378_v21, %s2997_s16  ;;  %v2376_v37 = vcombine.high %v2345_v26, %v1840_v44  ;;  %v575_v35 = vcombine.high %v2045_v32, %v1840_v44  ;;  %s3003_s16 = smov 82  }
  0xe3   :  { %v2372_v13 = vcombine.high %v2341_v9, %v1840_v44  ;;  %v2380_v19 = vcombine.high %v2353_v22, %v1840_v44  ;;  %v2385_v60 = vrot.slane %v526_v48, %v1963_v39  ;;  %v2389_v47 = vcombine.high %v2359_v25, %v1840_v44 }
  0xe4   :  { %v2393_v12 = vcombine.high %v2363_v3, %v1840_v44  ;;  %v2397_v57 = vcombine.high %v2367_v38, %v1840_v44  ;;  %v386_v32 = vrot.slane %v2035_v27, %v1963_v39  ;;  %v2403_v48 = vrot.slane %v575_v35, %v1963_v39 }
  0xe5   :  { %1067 = vrot.lane.b32.xlu0 %v347_v41, %s1862_s17  ;;  %v2419_v41 = vrot.slane %v2112_v24, %v1963_v39  ;;  %v395_v27 = vcombine.high %v378_v21, %v1840_v44  ;;  %v427_v35 = vrot.slane %v2237_v53, %v1963_v39  ;;  %v2443_v21 = vrot.slane %v2101_v8, %v1963_v39 }
  0xe6   :  { %3087 = vst [vmem:[#allocation34_spill] sm:$0xff] %v2393_v12  ;;  %3088 = vst [vmem:[#allocation35_spill] sm:$0xff] %v2397_v57  ;;  %v2411_v12 = vrot.slane %v2084_v58, %v1963_v39  ;;  %v2415_v57 = vcombine.high %v2385_v60, %v1840_v44  ;;  %1095 = vrot.lane.b32.xlu1 %v386_v32, %s2994_s18  ;;  %v2429_v58 = vcombine.high %v2407_v2, %v1840_v44  ;;  %s3000_s18 = smov 80  }
  0xe7   :  { %3089 = vst [vmem:[#allocation36_spill] sm:$0xff] %v2403_v48  ;;  %v2435_v24 = vcombine.high %v2419_v41, %v1840_v44  ;;  %v2439_v48 = vcombine.high %v2098_v7, %v1840_v44  ;;  %v2452_v53 = vcombine.high %v2159_v28, %v1840_v44  ;;  %v2464_v8 = vcombine.high %v2443_v21, %v1840_v44 }
  0xe8   :  { %v2425_v62 = vcombine.high %v2411_v12, %v1840_v44  ;;  %v2472_v28 = vrot.slane %v2147_v52, %v1963_v39 }
  0xe9   :  { %3091 = vst [vmem:[#allocation38_spill] sm:$0xff] %v2435_v24  ;;  %3092 = vst [vmem:[#allocation39_spill] sm:$0xff] %v2439_v48  ;;  %1091 = vrot.lane.b32.xlu0 %v395_v27, %s2993_s19  ;;  %v2456_v24 = vrot.slane %v2162_v29, %v1963_v39  ;;  %v2460_v48 = vcombine.high %v2165_v56, %v1840_v44  ;;  %v2468_v27 = vcombine.high %v2144_v51, %v1840_v44  ;;  %s2999_s19 = smov 62  }
  0xea   :  { %3090 = vst [vmem:[#allocation37_spill] sm:$0xff] %v2425_v62  ;;  %v2448_v62 = vcombine.high %v2104_v11, %v1840_v44  ;;  %3093 = vst [vmem:[#allocation40_spill] sm:$0xff] %v2452_v53  ;;  %1119 = vrot.lane.b32.xlu1 %v427_v35, %s2989_s1  ;;  %v396_v29 = vcombine.high %v386_v32, %v1840_v44  ;;  %v232_v51 = vcombine.high %v1982_v55, %v1840_v44  ;;  %s1874_s1 = smov 30  }
  0xeb   :  { %3094 = vst [vmem:[#allocation41_spill] sm:$0xff] %v2460_v48  ;;  %3095 = vst [vmem:[#allocation42_spill] sm:$0xff] %v2468_v27  ;;  %v435_v48 = vrot.slane %v2119_v16, %v1963_v39  ;;  %v2480_v53 = vcombine.high %v2456_v24, %v1840_v44  ;;  %v2486_v27 = vcombine.high %v2150_v23, %v1840_v44 }
  0xec   :  { %v2490_v52 = vcombine.high %v2472_v28, %v1840_v44  ;;  %v2494_v32 = vcombine.high %v2213_v4, %v1840_v44  ;;  %v2499_v16 = vrot.slane %v2216_v5, %v1963_v39  ;;  %v2503_v55 = vcombine.high %v2219_v14, %v1840_v44 }
  0xed   :  { %3096 = vst [vmem:[#allocation43_spill] sm:$0xff] %v2486_v27  ;;  %1099 = vrot.lane.b32.xlu0 %v396_v29, %s2992_s20  ;;  %v2507_v27 = vcombine.high %v2199_v49, %v1840_v44  ;;  %v2519_v5 = vcombine.high %v2272_v31, %v1840_v44  ;;  %v2523_v29 = vrot.slane %v2275_v33, %v1963_v39  ;;  %s2998_s20 = smov 76  }
  0xee   :  { %3097 = vst [vmem:[#allocation44_spill] sm:$0xff] %v2490_v52  ;;  %3098 = vst [vmem:[#allocation45_spill] sm:$0xff] %v2494_v32  ;;  %v2511_v52 = vrot.slane %v2202_v50, %v1963_v39  ;;  %v2515_v32 = vcombine.high %v2205_v61, %v1840_v44  ;;  %v2527_v49 = vcombine.high %v2278_v40, %v1840_v44  ;;  %1127 = vrot.lane.b32.xlu1 %v435_v48, %s2987_s0  ;;  %s1872_s0 = smov 14  }
  0xef   :  { %3100 = vst [vmem:[#allocation47_spill] sm:$0xff] %v2519_v5  ;;  %v444_v50 = vcombine.high %v427_v35, %v1840_v44  ;;  %v2541_v33 = vcombine.high %v2243_v46, %v1840_v44  ;;  %v2549_v40 = vrot.slane %v2246_v0, %v1963_v39  ;;  %v2553_v35 = vcombine.high %v2249_v1, %v1840_v44 }
  0xf0   :  { %3099 = vst [vmem:[#allocation46_spill] sm:$0xff] %v2515_v32  ;;  %3101 = vst [vmem:[#allocation48_spill] sm:$0xff] %v2527_v49  ;;  %v2533_v32 = vcombine.high %v2499_v16, %v1840_v44  ;;  %v2537_v5 = vcombine.high %v2511_v52, %v1840_v44  ;;  %v2545_v49 = vcombine.high %v2523_v29, %v1840_v44 }
  0xf1   :  { %3102 = vst [vmem:[#allocation49_spill] sm:$0xff] %v2541_v33  ;;  %3103 = vst [vmem:[#allocation50_spill] sm:$0xff] %v2553_v35  ;;  %1123 = vrot.lane.b32.xlu0 %v444_v50, %s2986_s21  ;;  %v246_v31 = vrot.slane %v232_v51, %v1963_v39  ;;  %v281_v33 = vcombine.high %v1993_v63, %v1840_v44  ;;  %v2561_v46 = vcombine.high %v2549_v40, %v1840_v44  ;;  %s1871_s21 = smov 28  }
  0xf2   :  { %v445_v0 = vcombine.high %v435_v48, %v1840_v44  ;;  %v3114_v48 = vld [vmem:[#allocation20_spill] sm:$0xff] }
  0xf3   :  { %1007 = vrot.lane.b32.xlu1 %v246_v31, %s1869_s22  ;;  %v295_v35 = vrot.slane %v281_v33, %v1963_v39  ;;  %v250_v51 = vcombine.high %v246_v31, %v1840_v44  ;;  %v3116_v33 = vld [vmem:[#allocation40_spill] sm:$0xff] }
  0xf5   :  { %1131 = vrot.lane.b32.xlu0 %v445_v0, %s2990_s23  ;;  %v299_v63 = vcombine.high %v295_v35, %v1840_v44  ;;  %s2996_s23 = smov 60   ;;  %v3117_v0 = vld [vmem:[#allocation41_spill] sm:$0xff] }
  0xf7   :  { %1039 = vrot.lane.b32.xlu1 %v295_v35, %s1871_s21 }
  0xf9   :  { %1011 = vrot.lane.b32.xlu0 %v250_v51, %s1872_s0 }
  0xfb   :  { %1071 = vrot.lane.b32.xlu1 %v2288_v18, %s1873_s5 }
  0xfd   :  { %1043 = vrot.lane.b32.xlu0 %v299_v63, %s1874_s1  ;;  %v3119_v63 = vld [vmem:[#allocation12_spill] sm:$0xff] }
  0xff   :  { %1103 = vrot.lane.b32.xlu1 %v2291_v43, %s2996_s23  ;;  %s3002_s23 = smov 84  }
 0x101   :  { %1075 = vrot.lane.b32.xlu0 %v2311_v59, %s1876_s29  ;;  %v3109_v59 = vld [vmem:[#allocation13_spill] sm:$0xff] }
 0x103   :  { %1135 = vrot.lane.b32.xlu1 %v2294_v6, %s2998_s20  ;;  %s3004_s20 = smov 88  }
 0x105   :  { %1107 = vrot.lane.b32.xlu0 %v2315_v20, %s2999_s19  ;;  %s3005_s19 = smov 86  }
 0x107   :  { %1143 = vrot.lane.b32.xlu1 %v2298_v15, %s3000_s18  ;;  %s3006_s18 = smov 92   ;;  %v3107_v15 = vld [vmem:[#allocation14_spill] sm:$0xff] }
 0x108   :  { %v639_v31 = vcombine.high %v3107_v15, %v1840_v44 }
 0x109   :  { %1139 = vrot.lane.b32.xlu0 %v2325_v36, %s3001_s30  ;;  %s3007_s30 = smov 90  }
 0x10b   :  { %1151 = vrot.lane.b32.xlu1 %v2302_v54, %s3002_s23  ;;  %s3008_s23 = smov 96  }
 0x10d   :  { %1147 = vrot.lane.b32.xlu0 %v2329_v42, %s3003_s16  ;;  %s3009_s16 = smov 94  }
 0x10f   :  { %1159 = vrot.lane.b32.xlu1 %v2306_v45, %s3004_s20  ;;  %s3010_s20 = smov 100   ;;  %v3108_v45 = vld [vmem:[#allocation37_spill] sm:$0xff] }
 0x111   :  { %1155 = vrot.lane.b32.xlu0 %v2333_v30, %s3005_s19  ;;  %s3011_s19 = smov 98  }
 0x113   :  { %1167 = vrot.lane.b32.xlu1 %v2341_v9, %s3006_s18  ;;  %s3012_s18 = smov 104   ;;  %v3111_v9 = vld [vmem:[#allocation15_spill] sm:$0xff] }
 0x115   :  { %1163 = vrot.lane.b32.xlu0 %v2337_v17, %s3007_s30  ;;  %s3013_s30 = smov 102  }
 0x117   :  { %1175 = vrot.lane.b32.xlu1 %v2321_v10, %s3008_s23  ;;  %s3014_s23 = smov 108   ;;  %v3110_v10 = vld [vmem:[#allocation38_spill] sm:$0xff] }
 0x119   :  { %1171 = vrot.lane.b32.xlu0 %v2372_v13, %s3009_s16  ;;  %s1894_s16 = smov 106  }
 0x11b   :  { %1183 = vrot.lane.b32.xlu1 %v2345_v26, %s3010_s20  ;;  %s3015_s20 = smov 112  }
 0x11d   :  { %1179 = vrot.lane.b32.xlu0 %v2349_v34, %s3011_s19  ;;  %s3016_s19 = smov 110  }
 0x11f   :  { %1191 = vrot.lane.b32.xlu1 %v2353_v22, %s3012_s18  ;;  %s1897_s18 = smov 116  }
 0x121   :  { %1187 = vrot.lane.b32.xlu0 %v2376_v37, %s3013_s30  ;;  %s3017_s30 = smov 114   ;;  %v3113_v37 = vld [vmem:[#allocation17_spill] sm:$0xff] }
 0x123   :  { %1199 = vrot.lane.b32.xlu1 %v2385_v60, %s3014_s23  ;;  %s1899_s23 = smov 120   ;;  %v3105_v60 = vld [vmem:[#allocation36_spill] sm:$0xff] }
 0x125   :  { %1195 = vrot.lane.b32.xlu0 %v2380_v19, %s1894_s16 }
 0x127   :  { %1207 = vrot.lane.b32.xlu1 %v2359_v25, %s3015_s20  ;;  %s1900_s20 = smov 118  }
 0x129   :  { %1203 = vrot.lane.b32.xlu0 %v2415_v57, %s3016_s19  ;;  %v3104_v57 = vld [vmem:[#allocation34_spill] sm:$0xff]  ;;  %s1901_s19 = smov 124  }
 0x12a   :  { %v2620_v39 = vpop.permute.xlu1 %1015 }
 0x12b   :  { %1215 = vrot.lane.b32.xlu1 %v2363_v3, %s1897_s18  ;;  %v3112_v3 = vld [vmem:[#allocation39_spill] sm:$0xff] }
 0x12c   :  { %v988_v13 = vpop.permute.xlu0 %987 }
 0x12d   :  { %1211 = vrot.lane.b32.xlu0 %v2389_v47, %s3017_s30  ;;  %s1902_s30 = smov 122   ;;  %v3106_v47 = vld [vmem:[#allocation35_spill] sm:$0xff] }
 0x12e   :  { %v2626_v22 = vpop.permute.xlu1 %1047 }
 0x12f   :  { %1223 = vrot.lane.b32.xlu1 %v2367_v38, %s1899_s23 }
 0x130   :  { %v2632_v43 = vpop.permute.xlu0 %1019 }
 0x131   :  { %1219 = vrot.lane.b32.xlu0 %v3104_v57, %s1900_s20  ;;  %v1491_v57 = vsel %vm1490_vm1, %v3119_v63, %v988_v13  ;;  %v3123_v13 = vld [vmem:[#allocation19_spill] sm:$0xff] }
 0x132   :  { %v2634_v34 = vpop.permute.xlu1 %1079 }
 0x133   :  { %1231 = vrot.lane.b32.xlu1 %v3105_v60, %s1901_s19 }
 0x134   :  { %v2640_v17 = vpop.permute.xlu0 %1051 }
 0x135   :  { %1227 = vrot.lane.b32.xlu0 %v3106_v47, %s1902_s30 }
 0x136   :  { %v2644_v30 = vpop.permute.xlu1 %1111 }
 0x137   :  { %1243 = vrot.lane.b32.xlu1 %v2407_v2, %s1849_s4  ;;  %s3132_s4 = smov 62  }
 0x138   :  { %v2649_v18 = vpop.permute.xlu0 %1083 }
 0x139   :  { %1239 = vrot.lane.b32.xlu0 %v639_v31, %s1842_s24  ;;  %s3122_s24 = smov 50  }
 0x13b   :  { %1251 = vrot.lane.b32.xlu1 %v2411_v12, %s1851_s6  ;;  %s3135_s6 = smov 66  }
 0x13c   :  { %v992_v6 = vpop.permute.xlu1 %991  ;;  %v2655_v2 = vpop.permute.xlu0 %1115 }
 0x13d   :  { %1247 = vrot.lane.b32.xlu0 %v2429_v58, %s1852_s7  ;;  %s3137_s7 = smov 72  }
 0x13f   :  { %1259 = vrot.lane.b32.xlu1 %v2419_v41, %s1869_s22  ;;  %s3156_s22 = smov 94  }
 0x140   :  { %v1000_v54 = vpop.permute.xlu1 %999 }
 0x141   :  { %1255 = vrot.lane.b32.xlu0 %v3108_v45, %s1854_s9  ;;  %v996_v20 = vpop.permute.xlu0 %995  ;;  %v3121_v45 = vld [vmem:[#allocation18_spill] sm:$0xff]  ;;  %s3140_s9 = smov 76  }
 0x143   :  { %1267 = vrot.lane.b32.xlu1 %v3109_v59, %s1841_s2  ;;  %s3120_s2 = smov 52  }
 0x144   :  { %v2661_v12 = vpop.permute.xlu1 %1023 }
 0x145   :  { %1263 = vrot.lane.b32.xlu0 %v3110_v10, %s1872_s0  ;;  %v1004_v36 = vpop.permute.xlu0 %1003  ;;  %s3152_s0 = smov 90  }
 0x147   :  { %1275 = vrot.lane.b32.xlu1 %v2098_v7, %s1853_s8  ;;  %s3138_s8 = smov 70  }
 0x148   :  { %v2667_v42 = vpop.permute.xlu1 %1031 }
 0x149   :  { %1271 = vrot.lane.b32.xlu0 %v3111_v9, %s1844_s26  ;;  %s3125_s26 = smov 54  }
 0x14b   :  { %1283 = vrot.lane.b32.xlu1 %v2104_v11, %s1855_s10  ;;  %v1028_v26 = vpop.permute.xlu0 %1027  ;;  %s3141_s10 = smov 74  }
 0x14c   :  { %v2673_v25 = vpop.permute.xlu1 %1055 }
 0x14d   :  { %1279 = vrot.lane.b32.xlu0 %v3112_v3, %s1856_s11  ;;  %s3142_s11 = smov 80  }
 0x14f   :  { %1291 = vrot.lane.b32.xlu1 %v2443_v21, %s1871_s21  ;;  %v2679_v38 = vpop.permute.xlu0 %1035  ;;  %v3115_v21 = vld [vmem:[#allocation21_spill] sm:$0xff]  ;;  %s3154_s21 = smov 96  }
 0x150   :  { %v2681_v7 = vpop.permute.xlu1 %1063 }
 0x151   :  { %1287 = vrot.lane.b32.xlu0 %v2448_v62, %s1858_s13  ;;  %s3145_s13 = smov 84  }
 0x153   :  { %1299 = vrot.lane.b32.xlu1 %v3113_v37, %s1843_s25  ;;  %v2687_v11 = vpop.permute.xlu0 %1059  ;;  %s3124_s25 = smov 56  }
 0x154   :  { %v2689_v19 = vpop.permute.xlu1 %1087 }
 0x155   :  { %1295 = vrot.lane.b32.xlu0 %v2464_v8, %s1874_s1  ;;  %s3151_s1 = smov 92  }
 0x157   :  { %1307 = vrot.lane.b32.xlu1 %v3114_v48, %s1857_s12  ;;  %v2695_v41 = vpop.permute.xlu0 %1067  ;;  %v3126_v48 = vld [vmem:[#allocation42_spill] sm:$0xff]  ;;  %s3144_s12 = smov 78  }
 0x158   :  { %v2697_v58 = vpop.permute.xlu1 %1095 }
 0x159   :  { %1303 = vrot.lane.b32.xlu0 %v3115_v21, %s1846_s28  ;;  %s3128_s28 = smov 58  }
 0x15b   :  { %1315 = vrot.lane.b32.xlu1 %v2165_v56, %s1859_s14  ;;  %v2703_v62 = vpop.permute.xlu0 %1091  ;;  %v3118_v56 = vld [vmem:[#allocation16_spill] sm:$0xff]  ;;  %s3147_s14 = smov 82  }
 0x15c   :  { %v2705_v50 = vpop.permute.xlu1 %1119 }
 0x15d   :  { %1311 = vrot.lane.b32.xlu0 %v3116_v33, %s1860_s15  ;;  %s3149_s15 = smov 88  }
 0x15f   :  { %1323 = vrot.lane.b32.xlu1 %v2456_v24, %s1873_s5  ;;  %v2711_v8 = vpop.permute.xlu0 %1099  ;;  %v1493_v24 = vsel %vm1492_vm2, %v1491_v57, %v992_v6  ;;  %s3134_s5 = smov 68  }
 0x160   :  { %v2713_v35 = vpop.permute.xlu1 %1127  ;;  %v1495_v31 = vsel %vm1494_vm3, %v1493_v24, %v996_v20  ;;  %v3133_v24 = vld [vmem:[#allocation44_spill] sm:$0xff] }
 0x161   :  { %1319 = vrot.lane.b32.xlu0 %v3117_v0, %s1862_s17  ;;  %v1497_v10 = vsel %vm1496_vm4, %v1495_v31, %v1000_v54  ;;  %s3150_s17 = smov 86  }
 0x162   :  { %v1499_v6 = vsel %vm1498_vm5, %v1497_v10, %v1004_v36 }
 0x163   :  { %1331 = vrot.lane.b32.xlu1 %v3118_v56, %s1845_s27  ;;  %v2719_v51 = vpop.permute.xlu0 %1123  ;;  %s3127_s27 = smov 60   ;;  %v3129_v56 = vld [vmem:[#allocation43_spill] sm:$0xff] }
 0x165   :  { %v1008_v47 = vpop.permute.xlu1 %1007  ;;  %1327 = vrot.lane.b32.xlu0 %v2480_v53, %s1876_s29  ;;  %s3130_s29 = smov 64  }
 0x166   :  { %v1501_v53 = vsel %vm1500_vm6, %v1499_v6, %v1008_v47  ;;  %v3139_v6 = vld [vmem:[#allocation45_spill] sm:$0xff] }
 0x167   :  { %1339 = vrot.lane.b32.xlu1 %v3121_v45, %s3120_s2  ;;  %v2729_v59 = vpop.permute.xlu0 %1131  ;;  %s3157_s2 = smov 100  }
 0x169   :  { %v1040_v9 = vpop.permute.xlu1 %1039  ;;  %1335 = vrot.lane.b32.xlu0 %v3123_v13, %s3122_s24  ;;  %s3159_s24 = smov 98  }
 0x16b   :  { %1347 = vrot.lane.b32.xlu1 %v2150_v23, %s3124_s25  ;;  %v1012_v20 = vpop.permute.xlu0 %1011  ;;  %s3161_s25 = smov 104  }
 0x16c   :  { %v1503_v3 = vsel %vm1502_vm7, %v1501_v53, %v1012_v20 }
 0x16d   :  { %v1505_v54 = vsel %vm1504_vm8, %v1503_v3, %v2620_v39  ;;  %v1072_v37 = vpop.permute.xlu1 %1071  ;;  %1343 = vrot.lane.b32.xlu0 %v3126_v48, %s3125_s26  ;;  %v3146_v48 = vld [vmem:[#allocation24_spill] sm:$0xff]  ;;  %s3163_s26 = smov 102  }
 0x16e   :  { %v1507_v36 = vsel %vm1506_vm9, %v1505_v54, %v2632_v43 }
 0x16f   :  { %v1509_v23 = vsel %vm3018_vm10, %v1507_v36, %v2661_v12  ;;  %1355 = vrot.lane.b32.xlu1 %v2472_v28, %s3127_s27  ;;  %v1044_v21 = vpop.permute.xlu0 %1043  ;;  %vm3026_vm10 = vcmask 277504   ;;  %v3131_v28 = vld [vmem:[#allocation23_spill] sm:$0xff]  ;;  %s3165_s27 = smov 108  }
 0x170   :  { %v1511_v33 = vsel %vm3019_vm11, %v1509_v23, %v1028_v26  ;;  %vm3025_vm11 = vcmask 293888  }
 0x171   :  { %v1513_v39 = vsel %vm3020_vm12, %v1511_v33, %v2667_v42  ;;  %v1104_v0 = vpop.permute.xlu1 %1103  ;;  %1351 = vrot.lane.b32.xlu0 %v3129_v56, %s3128_s28  ;;  %vm3027_vm12 = vcmask 310272   ;;  %s3167_s28 = smov 112  }
 0x172   :  { %v1515_v43 = vsel %vm3022_vm13, %v1513_v39, %v2679_v38  ;;  %vm3030_vm13 = vcmask 343040  }
 0x173   :  { %v1517_v12 = vsel %vm3021_vm14, %v1515_v43, %v1040_v9  ;;  %1363 = vrot.lane.b32.xlu1 %v3131_v28, %s3130_s29  ;;  %v1076_v26 = vpop.permute.xlu0 %1075  ;;  %vm3028_vm14 = vcmask 326656   ;;  %v3153_v28 = vld [vmem:[#allocation46_spill] sm:$0xff]  ;;  %s3169_s29 = smov 110  }
 0x174   :  { %v1519_v63 = vsel %vm3024_vm15, %v1517_v12, %v1044_v21  ;;  %vm3032_vm15 = vcmask 375808  }
 0x175   :  { %v1521_v42 = vsel %vm3023_vm0, %v1519_v63, %v2626_v22  ;;  %v2762_v57 = vpop.permute.xlu1 %1135  ;;  %1359 = vrot.lane.b32.xlu0 %v3133_v24, %s3132_s4  ;;  %vm3029_vm0 = vcmask 359424   ;;  %v3155_v63 = vld [vmem:[#allocation30_spill] sm:$0xff] }
 0x176   :  { %v1523_v38 = vsel %vm3026_vm10, %v1521_v42, %v2640_v17  ;;  %v3136_v17 = vld [vmem:[#allocation26_spill] sm:$0xff]  ;;  %vm3034_vm10 = vcmask 408576  }
 0x177   :  { %v1525_v47 = vsel %vm3025_vm11, %v1523_v38, %v2673_v25  ;;  %1371 = vrot.lane.b32.xlu1 %v2213_v4, %s3134_s5  ;;  %v1108_v31 = vpop.permute.xlu0 %1107  ;;  %vm3031_vm11 = vcmask 392192  }
 0x178   :  { %v1527_v22 = vsel %vm3027_vm12, %v1525_v47, %v2687_v11  ;;  %vm3033_vm12 = vcmask 424960  }
 0x179   :  { %v1529_v45 = vsel %vm3028_vm14, %v1527_v22, %v2681_v7  ;;  %v1144_v10 = vpop.permute.xlu1 %1143  ;;  %1367 = vrot.lane.b32.xlu0 %v3136_v17, %s3135_s6  ;;  %vm3035_vm14 = vcmask 441344  }
 0x17a   :  { %v1531_v25 = vsel %vm3030_vm13, %v1529_v45, %v2695_v41  ;;  %vm3038_vm13 = vcmask 474112  }
 0x17b   :  { %v1533_v9 = vsel %vm3029_vm0, %v1531_v25, %v1072_v37  ;;  %1379 = vrot.lane.b32.xlu1 %v2219_v14, %s3137_s7  ;;  %v1140_v4 = vpop.permute.xlu0 %1139  ;;  %vm3036_vm0 = vcmask 457728   ;;  %v3160_v25 = vld [vmem:[#allocation33_spill] sm:$0xff] }
 0x17c   :  { %v1535_v11 = vsel %vm3032_vm15, %v1533_v9, %v1076_v26  ;;  %vm3040_vm15 = vcmask 506880   ;;  %v3162_v9 = vld [vmem:[#allocation32_spill] sm:$0xff] }
 0x17d   :  { %v1537_v7 = vsel %vm3031_vm11, %v1535_v11, %v2634_v34  ;;  %v1152_v13 = vpop.permute.xlu1 %1151  ;;  %1375 = vrot.lane.b32.xlu0 %v3139_v6, %s3138_s8  ;;  %vm3037_vm11 = vcmask 490496   ;;  %v3164_v6 = vld [vmem:[#allocation47_spill] sm:$0xff] }
 0x17e   :  { %v1539_v41 = vsel %vm3034_vm10, %v1537_v7, %v2649_v18  ;;  %vm3042_vm10 = vcmask 539648  }
 0x17f   :  { %v1541_v53 = vsel %vm3033_vm12, %v1539_v41, %v2689_v19  ;;  %1387 = vrot.lane.b32.xlu1 %v2499_v16, %s3140_s9  ;;  %v1148_v14 = vpop.permute.xlu0 %1147  ;;  %vm3039_vm12 = vcmask 523264   ;;  %v3143_v16 = vld [vmem:[#allocation22_spill] sm:$0xff] }
 0x180   :  { %v1543_v34 = vsel %vm3035_vm14, %v1541_v53, %v2703_v62  ;;  %vm3041_vm14 = vcmask 556032  }
 0x181   :  { %v1545_v20 = vsel %vm3036_vm0, %v1543_v34, %v2697_v58  ;;  %v1160_v3 = vpop.permute.xlu1 %1159  ;;  %1383 = vrot.lane.b32.xlu0 %v2503_v55, %s3141_s10  ;;  %vm3044_vm0 = vcmask 572416  }
 0x182   :  { %v1547_v18 = vsel %vm3038_vm13, %v1545_v20, %v2711_v8  ;;  %vm3045_vm13 = vcmask 605184   ;;  %v3166_v20 = vld [vmem:[#allocation48_spill] sm:$0xff] }
 0x183   :  { %v1549_v19 = vsel %vm3037_vm11, %v1547_v18, %v1104_v0  ;;  %1395 = vrot.lane.b32.xlu1 %v3143_v16, %s3142_s11  ;;  %v1156_v62 = vpop.permute.xlu0 %1155  ;;  %vm3043_vm11 = vcmask 588800   ;;  %v3168_v18 = vld [vmem:[#allocation27_spill] sm:$0xff] }
 0x184   :  { %v1551_v54 = vsel %vm3040_vm15, %v1549_v19, %v1108_v31  ;;  %vm3047_vm15 = vcmask 637952   ;;  %v3158_v31 = vld [vmem:[#allocation31_spill] sm:$0xff] }
 0x185   :  { %v1553_v58 = vsel %vm3039_vm12, %v1551_v54, %v2644_v30  ;;  %v1168_v37 = vpop.permute.xlu1 %1167  ;;  %1391 = vrot.lane.b32.xlu0 %v2533_v32, %s3144_s12  ;;  %vm3046_vm12 = vcmask 621568   ;;  %v3170_v54 = vld [vmem:[#allocation28_spill] sm:$0xff] }
 0x186   :  { %v1555_v55 = vsel %vm3042_vm10, %v1553_v58, %v2655_v2  ;;  %v3148_v2 = vld [vmem:[#allocation25_spill] sm:$0xff]  ;;  %vm3049_vm10 = vcmask 670720  }
 0x187   :  { %v1557_v8 = vsel %vm3041_vm14, %v1555_v55, %v2705_v50  ;;  %1403 = vrot.lane.b32.xlu1 %v3146_v48, %s3145_s13  ;;  %v1164_v36 = vpop.permute.xlu0 %1163  ;;  %vm3048_vm14 = vcmask 654336  }
 0x188   :  { %v1559_v30 = vsel %vm3044_vm0, %v1557_v8, %v2719_v51  ;;  %vm3051_vm0 = vcmask 703488   ;;  %v3172_v8 = vld [vmem:[#allocation29_spill] sm:$0xff] }
 0x189   :  { %v1561_v23 = vsel %vm3043_vm11, %v1559_v30, %v2713_v35  ;;  %v1176_v32 = vpop.permute.xlu1 %1175  ;;  %1399 = vrot.lane.b32.xlu0 %v3148_v2, %s3147_s14  ;;  %vm3050_vm11 = vcmask 687104  }
 0x18a   :  { %v1563_v50 = vsel %vm3045_vm13, %v1561_v23, %v2729_v59  ;;  %vm3052_vm13 = vcmask 719872   ;;  %v3173_v23 = vld [vmem:[#allocation49_spill] sm:$0xff] }
 0x18b   :  { %v1565_v21 = vsel %vm3046_vm12, %v1563_v50, %v2762_v57  ;;  %1411 = vrot.lane.b32.xlu1 %v2205_v61, %s3149_s15  ;;  %v1172_v51 = vpop.permute.xlu0 %1171  ;;  %vm3053_vm12 = vcmask 736256  }
 0x18c   :  { %v1567_v33 = vsel %vm3047_vm15, %v1565_v21, %v1140_v4  ;;  %vm3054_vm15 = vcmask 752640  }
 0x18d   :  { %v1569_v35 = vsel %vm3048_vm14, %v1567_v33, %v1144_v10  ;;  %v1184_v39 = vpop.permute.xlu1 %1183  ;;  %1407 = vrot.lane.b32.xlu0 %v2507_v27, %s3150_s17  ;;  %vm3055_vm14 = vcmask 769024  }
 0x18e   :  { %v1571_v59 = vsel %vm3049_vm10, %v1569_v35, %v1148_v14  ;;  %vm3056_vm10 = vcmask 785408  }
 0x18f   :  { %v1573_v0 = vsel %vm3050_vm11, %v1571_v59, %v1152_v13  ;;  %1419 = vrot.lane.b32.xlu1 %v2511_v52, %s3151_s1  ;;  %v1180_v61 = vpop.permute.xlu0 %1179  ;;  %vm3057_vm11 = vcmask 801792  }
 0x190   :  { %v1575_v56 = vsel %vm3051_vm0, %v1573_v0, %v1156_v62  ;;  %vm1588_vm0 = vcmask 818176  }
 0x191   :  { %v1577_v43 = vsel %vm3052_vm13, %v1575_v56, %v1160_v3  ;;  %v1192_v12 = vpop.permute.xlu1 %1191  ;;  %1415 = vrot.lane.b32.xlu0 %v3153_v28, %s3152_s0  ;;  %vm3059_vm13 = vcmask 834560  }
 0x192   :  { %v1579_v27 = vsel %vm3053_vm12, %v1577_v43, %v1164_v36  ;;  %vm3058_vm12 = vcmask 850944  }
 0x193   :  { %v1581_v26 = vsel %vm3054_vm15, %v1579_v27, %v1168_v37  ;;  %1427 = vrot.lane.b32.xlu1 %v3155_v63, %s3154_s21  ;;  %v1188_v52 = vpop.permute.xlu0 %1187  ;;  %vm1594_vm15 = vcmask 867328  }
 0x194   :  { %v1583_v42 = vsel %vm3055_vm14, %v1581_v26, %v1172_v51  ;;  %vm3061_vm14 = vcmask 883712   ;;  %v3174_v51 = vld [vmem:[#allocation50_spill] sm:$0xff] }
 0x195   :  { %v1585_v57 = vsel %vm3056_vm10, %v1583_v42, %v1176_v32  ;;  %v1200_v24 = vpop.permute.xlu1 %1199  ;;  %1423 = vrot.lane.b32.xlu0 %v2537_v5, %s3156_s22  ;;  %vm3060_vm10 = vcmask 900096  }
 0x196   :  { %v1587_v38 = vsel %vm3057_vm11, %v1585_v57, %v1180_v61  ;;  %vm3063_vm11 = vcmask 916480  }
 0x197   :  { %v1589_v47 = vsel %vm1588_vm0, %v1587_v38, %v1184_v39  ;;  %1435 = vrot.lane.b32.xlu1 %v3158_v31, %s3157_s2  ;;  %v1196_v22 = vpop.permute.xlu0 %1195 }
 0x198   :  { %v1591_v45 = vsel %vm3059_vm13, %v1589_v47, %v1188_v52  ;;  %vm1604_vm13 = vcmask 949248  }
 0x199   :  { %v1593_v10 = vsel %vm3058_vm12, %v1591_v45, %v1192_v12  ;;  %v1208_v17 = vpop.permute.xlu1 %1207  ;;  %1431 = vrot.lane.b32.xlu0 %v3160_v25, %s3159_s24  ;;  %vm3062_vm12 = vcmask 932864  }
 0x19a   :  { %v1595_v5 = vsel %vm1594_vm15, %v1593_v10, %v1196_v22 }
 0x19b   :  { %1443 = vrot.lane.b32.xlu1 %v3162_v9, %s3161_s25  ;;  %v1597_v4 = vsel %vm3061_vm14, %v1595_v5, %v1200_v24  ;;  %v1204_v11 = vpop.permute.xlu0 %1203  ;;  %vm1608_vm14 = vcmask 982016  }
 0x19c   :  { %v1599_v7 = vsel %vm3060_vm10, %v1597_v4, %v1204_v11  ;;  %vm1606_vm10 = vcmask 965632  }
 0x19d   :  { %v1216_v13 = vpop.permute.xlu1 %1215  ;;  %1439 = vrot.lane.b32.xlu0 %v3164_v6, %s3163_s26  ;;  %v1601_v41 = vsel %vm3063_vm11, %v1599_v7, %v1208_v17  ;;  %vm1612_vm11 = vcmask 1014784  }
 0x19f   :  { %1451 = vrot.lane.b32.xlu1 %v2523_v29, %s3165_s27  ;;  %v1212_v53 = vpop.permute.xlu0 %1211 }
 0x1a0   :  { %v1603_v14 = vsel %vm3062_vm12, %v1601_v41, %v1212_v53  ;;  %vm1610_vm12 = vcmask 998400  }
 0x1a1   :  { %v1224_v34 = vpop.permute.xlu1 %1223  ;;  %1447 = vrot.lane.b32.xlu0 %v3166_v20, %s1894_s16  ;;  %v1605_v3 = vsel %vm1604_vm13, %v1603_v14, %v1216_v13  ;;  %s3171_s16 = smov 114  }
 0x1a3   :  { %1459 = vrot.lane.b32.xlu1 %v3168_v18, %s3167_s28  ;;  %v1220_v19 = vpop.permute.xlu0 %1219 }
 0x1a4   :  { %v1607_v16 = vsel %vm1606_vm10, %v1605_v3, %v1220_v19 }
 0x1a5   :  { %v1232_v62 = vpop.permute.xlu1 %1231  ;;  %1455 = vrot.lane.b32.xlu0 %v2545_v49, %s3169_s29  ;;  %v1609_v29 = vsel %vm1608_vm14, %v1607_v16, %v1224_v34 }
 0x1a7   :  { %1467 = vrot.lane.b32.xlu1 %v3170_v54, %s1897_s18  ;;  %v1228_v58 = vpop.permute.xlu0 %1227  ;;  %s1903_s18 = smov 126  }
 0x1a8   :  { %v1611_v37 = vsel %vm1610_vm12, %v1609_v29, %v1228_v58 }
 0x1a9   :  { %v1244_v55 = vpop.permute.xlu1 %1243  ;;  %1463 = vrot.lane.b32.xlu0 %v3172_v8, %s3171_s16  ;;  %v2882_v48 = vsel %vm1612_vm11, %v1611_v37, %v1232_v62 }
 0x1ab   :  { %1475 = vrot.lane.b32.xlu1 %v2249_v1, %s1899_s23  ;;  %v1240_v49 = vpop.permute.xlu0 %1239  ;;  %v593_v1 = vcombine.high %v3105_v60, %v1840_v44 }
 0x1ac   :  { %v1616_v36 = vsel %vm1490_vm1, %v3107_v15, %v1240_v49  ;;  %vm3175_vm1 = vcmask 162816  }
 0x1ad   :  { %v1252_v30 = vpop.permute.xlu1 %1251  ;;  %1471 = vrot.lane.b32.xlu0 %v3173_v23, %s1900_s20  ;;  %v1617_v32 = vsel %vm1492_vm2, %v1616_v36, %v1244_v55  ;;  %vm3176_vm2 = vcmask 179200  }
 0x1af   :  { %1483 = vrot.lane.b32.xlu1 %v2549_v40, %s1901_s19  ;;  %v1248_v2 = vpop.permute.xlu0 %1247 }
 0x1b0   :  { %v1618_v50 = vsel %vm1494_vm3, %v1617_v32, %v1248_v2  ;;  %vm3177_vm3 = vcmask 195584  }
 0x1b1   :  { %v1260_v21 = vpop.permute.xlu1 %1259  ;;  %1479 = vrot.lane.b32.xlu0 %v3174_v51, %s1902_s30  ;;  %v1619_v15 = vsel %vm1496_vm4, %v1618_v50, %v1252_v30  ;;  %vm3178_vm4 = vcmask 211968   ;;  %s1905_s30 = smov [#allocation7]  }
 0x1b2   :  { %s1708_s19 = sshll.u32 %s1905_s30, 4  ;;  %s1709_s19 = int_to_ptr.vmem [resolvable:$true] %s1708_s19 }
 0x1b3   :  { %1487 = vrot.lane.b32.xlu1 %v2561_v46, %s1903_s18  ;;  %v1256_v33 = vpop.permute.xlu0 %1255  ;;  %s1810_s20 = scalar_lea.vmem %s1709_s19, 32  ;;  %p1815_p6 = scmp.lt.s32.totalorder %s1709_s19, %s1709_s19 }
 0x1b4   :  { %v1620_v35 = vsel %vm1498_vm5, %v1619_v15, %v1256_v33  ;;  %vm3179_vm5 = vcmask 228352   ;;  %p1811_p5 = scmp.ne.s32.totalorder %s1709_s19, %s1810_s20  ;;  %p1816_p7 = scmp.lt.s32.totalorder %s1810_s20, %s1810_s20 }
 0x1b5   :  { %v1268_v39 = vpop.permute.xlu1 %1267  ;;  %1235 = vrot.lane.b32.xlu0 %v593_v1, %s1903_s18  ;;  %v1621_v40 = vsel %vm1500_vm6, %v1620_v35, %v1260_v21  ;;  %vm3180_vm6 = vcmask 244736  }
 0x1b6   :  { %p1817_p8 = por %p1816_p7, %p1815_p6 }
 0x1b7   :  { %v1264_v59 = vpop.permute.xlu0 %1263 }
 0x1b8   :  { %v1622_v0 = vsel %vm1502_vm7, %v1621_v40, %v1264_v59  ;;  %vm3181_vm7 = vcmask 261120   ;;  %p1818_p9 = pnand %p1817_p8, %p1811_p5 }
 0x1b9   :  { %v1276_v61 = vpop.permute.xlu1 %1275  ;;  %v1623_v56 = vsel %vm1504_vm8, %v1622_v0, %v1268_v39  ;;  %vm3182_vm8 = vcmask 277504  }
 0x1bb   :  { %v1272_v43 = vpop.permute.xlu0 %1271 }
 0x1bc   :  { %v1624_v44 = vsel %vm1506_vm9, %v1623_v56, %v1272_v43  ;;  %vm3183_vm9 = vcmask 293888  }
 0x1bd   :  { %v1284_v60 = vpop.permute.xlu1 %1283  ;;  %v1625_v12 = vsel %vm3175_vm1, %v1624_v44, %v1276_v61  ;;  %vm3184_vm1 = vcmask 310272  }
 0x1bf   :  { %v1280_v46 = vpop.permute.xlu0 %1279 }
 0x1c0   :  { %v1626_v28 = vsel %vm3176_vm2, %v1625_v12, %v1280_v46  ;;  %vm3185_vm2 = vcmask 326656  }
 0x1c1   :  { %v1292_v27 = vpop.permute.xlu1 %1291  ;;  %v1627_v26 = vsel %vm3177_vm3, %v1626_v28, %v1284_v60  ;;  %vm3186_vm3 = vcmask 343040  }
 0x1c3   :  { %v1288_v63 = vpop.permute.xlu0 %1287 }
 0x1c4   :  { %v1628_v52 = vsel %vm3178_vm4, %v1627_v26, %v1288_v63  ;;  %vm3187_vm4 = vcmask 359424  }
 0x1c5   :  { %v1300_v42 = vpop.permute.xlu1 %1299  ;;  %v1629_v57 = vsel %vm3179_vm5, %v1628_v52, %v1292_v27  ;;  %vm3188_vm5 = vcmask 375808  }
 0x1c7   :  { %v1296_v24 = vpop.permute.xlu0 %1295 }
 0x1c8   :  { %v1630_v38 = vsel %vm3180_vm6, %v1629_v57, %v1296_v24  ;;  %vm3189_vm6 = vcmask 392192  }
 0x1c9   :  { %v1308_v47 = vpop.permute.xlu1 %1307  ;;  %v1631_v31 = vsel %vm3181_vm7, %v1630_v38, %v1300_v42  ;;  %vm3190_vm7 = vcmask 408576  }
 0x1cb   :  { %v1304_v22 = vpop.permute.xlu0 %1303 }
 0x1cc   :  { %v1632_v45 = vsel %vm3182_vm8, %v1631_v31, %v1304_v22  ;;  %vm3191_vm8 = vcmask 424960  }
 0x1cd   :  { %v1316_v10 = vpop.permute.xlu1 %1315  ;;  %v1633_v17 = vsel %vm3183_vm9, %v1632_v45, %v1308_v47  ;;  %vm3192_vm9 = vcmask 441344  }
 0x1cf   :  { %v1312_v25 = vpop.permute.xlu0 %1311 }
 0x1d0   :  { %v1634_v5 = vsel %vm3184_vm1, %v1633_v17, %v1312_v25  ;;  %vm3193_vm1 = vcmask 457728  }
 0x1d1   :  { %v1324_v9 = vpop.permute.xlu1 %1323  ;;  %v1635_v4 = vsel %vm3185_vm2, %v1634_v5, %v1316_v10  ;;  %vm3194_vm2 = vcmask 474112  }
 0x1d3   :  { %v1320_v11 = vpop.permute.xlu0 %1319 }
 0x1d4   :  { %v1636_v7 = vsel %vm3186_vm3, %v1635_v4, %v1320_v11  ;;  %vm3195_vm3 = vcmask 490496  }
 0x1d5   :  { %v1332_v13 = vpop.permute.xlu1 %1331  ;;  %v1637_v6 = vsel %vm3187_vm4, %v1636_v7, %v1324_v9  ;;  %vm3196_vm4 = vcmask 506880  }
 0x1d7   :  { %v1328_v41 = vpop.permute.xlu0 %1327 }
 0x1d8   :  { %v1638_v53 = vsel %vm3188_vm5, %v1637_v6, %v1328_v41  ;;  %vm3197_vm5 = vcmask 523264  }
 0x1d9   :  { %v1340_v14 = vpop.permute.xlu1 %1339  ;;  %v1639_v34 = vsel %vm3189_vm6, %v1638_v53, %v1332_v13  ;;  %vm3198_vm6 = vcmask 539648  }
 0x1db   :  { %v1336_v20 = vpop.permute.xlu0 %1335 }
 0x1dc   :  { %v1640_v3 = vsel %vm3190_vm7, %v1639_v34, %v1336_v20  ;;  %vm3199_vm7 = vcmask 556032  }
 0x1dd   :  { %v1348_v18 = vpop.permute.xlu1 %1347  ;;  %v1641_v19 = vsel %vm3191_vm8, %v1640_v3, %v1340_v14  ;;  %vm3200_vm8 = vcmask 572416  }
 0x1df   :  { %v1344_v16 = vpop.permute.xlu0 %1343 }
 0x1e0   :  { %v1642_v62 = vsel %vm3192_vm9, %v1641_v19, %v1344_v16  ;;  %vm3201_vm9 = vcmask 588800  }
 0x1e1   :  { %v1356_v29 = vpop.permute.xlu1 %1355  ;;  %v1643_v54 = vsel %vm3193_vm1, %v1642_v62, %v1348_v18  ;;  %vm3202_vm1 = vcmask 605184  }
 0x1e3   :  { %v1352_v58 = vpop.permute.xlu0 %1351 }
 0x1e4   :  { %v1644_v37 = vsel %vm3194_vm2, %v1643_v54, %v1352_v58  ;;  %vm3203_vm2 = vcmask 621568  }
 0x1e5   :  { %v1364_v55 = vpop.permute.xlu1 %1363  ;;  %v1645_v8 = vsel %vm3195_vm3, %v1644_v37, %v1356_v29  ;;  %vm3204_vm3 = vcmask 637952   ;;  %v1904_v29 = vmov 1966171168  }
 0x1e6   :  { %v1683_v54 = vunpack.c.l.s4 %v1904_v29 }
 0x1e7   :  { %v1360_v49 = vpop.permute.xlu0 %1359 }
 0x1e8   :  { %v1646_v36 = vsel %vm3196_vm4, %v1645_v8, %v1360_v49  ;;  %vm3205_vm4 = vcmask 654336   ;;  %v1684_v49 = vunpack.c.0.s8 %v1683_v54 }
 0x1e9   :  { %v1372_v30 = vpop.permute.xlu1 %1371  ;;  %v1647_v23 = vsel %vm3197_vm5, %v1646_v36, %v1364_v55  ;;  %vm3206_vm5 = vcmask 670720  }
 0x1eb   :  { %v1368_v32 = vpop.permute.xlu0 %1367 }
 0x1ec   :  { %v1648_v2 = vsel %vm3198_vm6, %v1647_v23, %v1368_v32  ;;  %vm3207_vm6 = vcmask 687104  }
 0x1ed   :  { %v1380_v50 = vpop.permute.xlu1 %1379  ;;  %v1649_v21 = vsel %vm3199_vm7, %v1648_v2, %v1372_v30  ;;  %vm3208_vm7 = vcmask 703488   ;;  %v3221_v2 = vld [vmem:[#allocation11_spill] sm:$0xff] }
 0x1ef   :  { %v1376_v51 = vpop.permute.xlu0 %1375 }
 0x1f0   :  { %v1650_v1 = vsel %vm3200_vm8, %v1649_v21, %v1376_v51  ;;  %vm3209_vm8 = vcmask 719872  }
 0x1f1   :  { %v1388_v15 = vpop.permute.xlu1 %1387  ;;  %v1651_v33 = vsel %vm3201_vm9, %v1650_v1, %v1380_v50  ;;  %vm3210_vm9 = vcmask 736256   ;;  %v1687_v50 = vsub.s32 %v1684_v49, %v3221_v2 }
 0x1f3   :  { %v1384_v35 = vpop.permute.xlu0 %1383 }
 0x1f4   :  { %v1652_v39 = vsel %vm3202_vm1, %v1651_v33, %v1384_v35  ;;  %vm3211_vm1 = vcmask 752640   ;;  %v3222_v33 = vlaneseq }
 0x1f5   :  { %v1396_v40 = vpop.permute.xlu1 %1395  ;;  %v1653_v59 = vsel %vm3203_vm2, %v1652_v39, %v1388_v15  ;;  %vm3212_vm2 = vcmask 769024  }
 0x1f7   :  { %v1392_v0 = vpop.permute.xlu0 %1391 }
 0x1f8   :  { %v1654_v61 = vsel %vm3204_vm3, %v1653_v59, %v1392_v0  ;;  %vm3213_vm3 = vcmask 785408  }
 0x1f9   :  { %v1404_v56 = vpop.permute.xlu1 %1403  ;;  %v1655_v43 = vsel %vm3205_vm4, %v1654_v61, %v1396_v40  ;;  %vm3214_vm4 = vcmask 801792  }
 0x1fb   :  { %v1400_v44 = vpop.permute.xlu0 %1399 }
 0x1fc   :  { %v1656_v60 = vsel %vm3206_vm5, %v1655_v43, %v1400_v44  ;;  %vm3215_vm5 = vcmask 834560  }
 0x1fd   :  { %v1412_v12 = vpop.permute.xlu1 %1411  ;;  %v1657_v46 = vsel %vm3207_vm6, %v1656_v60, %v1404_v56  ;;  %vm3216_vm6 = vcmask 850944  }
 0x1ff   :  { %v1408_v28 = vpop.permute.xlu0 %1407 }
 0x200   :  { %v1658_v27 = vsel %vm3208_vm7, %v1657_v46, %v1408_v28  ;;  %vm3217_vm7 = vcmask 883712  }
 0x201   :  { %v1420_v26 = vpop.permute.xlu1 %1419  ;;  %v1659_v63 = vsel %vm3209_vm8, %v1658_v27, %v1412_v12  ;;  %vm3218_vm8 = vcmask 900096  }
 0x203   :  { %v1416_v52 = vpop.permute.xlu0 %1415 }
 0x204   :  { %v1660_v42 = vsel %vm3210_vm9, %v1659_v63, %v1416_v52  ;;  %vm3219_vm9 = vcmask 916480  }
 0x205   :  { %v1428_v57 = vpop.permute.xlu1 %1427  ;;  %v1661_v24 = vsel %vm3211_vm1, %v1660_v42, %v1420_v26 }
 0x207   :  { %v1424_v38 = vpop.permute.xlu0 %1423 }
 0x208   :  { %v1662_v47 = vsel %vm3212_vm2, %v1661_v24, %v1424_v38 }
 0x209   :  { %v1436_v31 = vpop.permute.xlu1 %1435  ;;  %v1663_v22 = vsel %vm3213_vm3, %v1662_v47, %v1428_v57 }
 0x20b   :  { %v1432_v45 = vpop.permute.xlu0 %1431 }
 0x20c   :  { %v1664_v10 = vsel %vm3214_vm4, %v1663_v22, %v1432_v45 }
 0x20d   :  { %v1444_v17 = vpop.permute.xlu1 %1443  ;;  %v1665_v25 = vsel %vm1588_vm0, %v1664_v10, %v1436_v31  ;;  %vm3220_vm0 = vcmask 932864  }
 0x20f   :  { %v1440_v5 = vpop.permute.xlu0 %1439 }
 0x210   :  { %v1666_v9 = vsel %vm3215_vm5, %v1665_v25, %v1440_v5 }
 0x211   :  { %v1452_v4 = vpop.permute.xlu1 %1451  ;;  %v1667_v11 = vsel %vm3216_vm6, %v1666_v9, %v1444_v17 }
 0x213   :  { %v1448_v7 = vpop.permute.xlu0 %1447 }
 0x214   :  { %v1668_v13 = vsel %vm1594_vm15, %v1667_v11, %v1448_v7  ;;  %vm1614_vm15 = vcmask 1031168  }
 0x215   :  { %v1460_v6 = vpop.permute.xlu1 %1459  ;;  %v1669_v41 = vsel %vm3217_vm7, %v1668_v13, %v1452_v4 }
 0x217   :  { %v1456_v53 = vpop.permute.xlu0 %1455 }
 0x218   :  { %v1670_v14 = vsel %vm3218_vm8, %v1669_v41, %v1456_v53 }
 0x219   :  { %v1468_v34 = vpop.permute.xlu1 %1467  ;;  %v1671_v20 = vsel %vm3219_vm9, %v1670_v14, %v1460_v6 }
 0x21b   :  { %v1464_v3 = vpop.permute.xlu0 %1463 }
 0x21c   :  { %v1672_v18 = vsel %vm3220_vm0, %v1671_v20, %v1464_v3 }
 0x21d   :  { %v1476_v19 = vpop.permute.xlu1 %1475  ;;  %v1673_v16 = vsel %vm1604_vm13, %v1672_v18, %v1468_v34 }
 0x21f   :  { %v1472_v62 = vpop.permute.xlu0 %1471 }
 0x220   :  { %v1674_v58 = vsel %vm1606_vm10, %v1673_v16, %v1472_v62  ;;  %vm1699_vm10 = vcmp.lt.s32.totalorder %v3222_v33, 256 }
 0x221   :  { %v1484_v37 = vpop.permute.xlu1 %1483  ;;  %v1675_v55 = vsel %vm1608_vm14, %v1674_v58, %v1476_v19 }
 0x223   :  { %v1480_v8 = vpop.permute.xlu0 %1479 }
 0x224   :  { %v1676_v36 = vsel %vm1610_vm12, %v1675_v55, %v1480_v8 }
 0x225   :  { %v1488_v30 = vpop.permute.xlu1 %1487  ;;  %v1677_v23 = vsel %vm1612_vm11, %v1676_v36, %v1484_v37 }
 0x226   :  { %v1678_v21 = vsel %vm1614_vm15, %v1677_v23, %v1488_v30 }
 0x227   :  { %v1236_v32 = vpop.permute.xlu0 %1235 }
 0x228   :  { %v1615_v51 = vsel %vm1614_vm15, %v2882_v48, %v1236_v32 }
 0x229   :  { %v1681_v1 = vcombine.low %v1615_v51, %v1678_v21 }
 0x22b   :  { %v1688_v15 = vrot.slane %v1681_v1, %v1687_v50 }
 0x22d   :  { %v1695_v35 = vrot.slane %v1688_v15, %v1687_v50 }
 0x22f   :  { %1701 = vst.msk [vmem:[#allocation7] sm:$0x3] %vm1699_vm10, %v1695_v35 }
 0x230   :  { %1821 = shalt.err (!%p1818_p9)
}
 0x231   :  { %1711 = dma.vmem_to_hbm [thread:$0]  %s1709_s19, 32, %s2967_s3, [#allocation3]  }
 0x232   :  { %1834 = dma.done.wait [#allocation3], 32  }
 0x233   :  { %1835 = vsyncadd [#allocation3], 4294967264 }
 0x234   :  { %1715 = vsyncpa [#allocation3], 1 }
 0x235   :  { %1716 = vsyncpa [#allocation4], 1 }
 0x236   :  { %1717 = vsyncpa [#allocation5], 1 }

</bundles_post_ra>
